<compile_context>
chip_gen: v5e
topology: v5e:2x2
jax: 0.10.0
libtpu: 0.0.40
codegen_flags: <defaults>
</compile_context>

<pallas_src>
import functools
import math

import jax
import jax.numpy as jnp
from jax.experimental import pallas as pl
from jax.experimental.pallas import tpu as pltpu

_SQRT2 = math.sqrt(2.0)


def _scaled_leaky_relu_kernel(x_ref, o_ref, *, negative_slope):
    x = x_ref[...]
    pos = jnp.asarray(_SQRT2, x.dtype)
    neg = jnp.asarray(negative_slope * _SQRT2, x.dtype)
    o_ref[...] = (x * jnp.where(x >= 0, pos, neg)).astype(o_ref.dtype)


def _choose_layout(total, itemsize, block_bytes):
    """Pick (lane, rows, pad, block_rows) for a lane-dense 2-D view."""
    lane = None
    for cand in (1024, 512, 256, 128):
        if total % cand == 0:
            lane = cand
            break
    pad = 0
    if lane is None:
        # Rare fallback: pad the flat tensor by < 128 elements so it reshapes
        # to (rows, 128).  Tiny pad, not a full extra HBM pass.
        lane = 128
        pad = (-total) % lane
    rows = (total + pad) // lane

    target_rows = max(1, (block_bytes // itemsize) // lane)
    if target_rows >= rows:
        block_rows = rows            # whole slab in one step (full-dim block is legal)
    else:
        block_rows = max(8, (target_rows // 8) * 8)   # sublane-aligned
        block_rows = min(block_rows, rows)
    return lane, rows, pad, block_rows


def scaled_leaky_relu(x, negative_slope=0.2, *, block_bytes=2 << 20,
                      donate_input=False):
    """ScaledLeakyReLU forward.  Elementwise, so any input rank/shape works.

    donate_input=True aliases the output HBM buffer onto the flattened input
    buffer (input_output_aliases); only use it when `x` is no longer needed.
    """
    orig_shape = x.shape
    orig_dtype = x.dtype
    total = x.size
    itemsize = jnp.dtype(orig_dtype).itemsize

    lane, rows, pad, block_rows = _choose_layout(total, itemsize, block_bytes)

    x_flat = jnp.ravel(x)
    if pad:
        x_flat = jnp.pad(x_flat, (0, pad))
    x2d = x_flat.reshape(rows, lane)

    grid = (pl.cdiv(rows, block_rows),)

    kernel = functools.partial(_scaled_leaky_relu_kernel,
                               negative_slope=negative_slope)

    extra = {"input_output_aliases": {0: 0}} if donate_input else {}

    out2d = pl.pallas_call(
        kernel,
        out_shape=jax.ShapeDtypeStruct((rows, lane), orig_dtype),
        grid_spec=pl.GridSpec(
            grid=grid,
            in_specs=[pl.BlockSpec((block_rows, lane), lambda i: (i, 0))],
            out_specs=pl.BlockSpec((block_rows, lane), lambda i: (i, 0)),
        ),
        compiler_params=pltpu.CompilerParams(
            dimension_semantics=("parallel",),
            vmem_limit_bytes=32 << 20,
        ),
        **extra,
    )(x2d)

    if pad:
        return out2d.reshape(-1)[:total].reshape(orig_shape)
    return out2d.reshape(orig_shape)


def _reference(x, negative_slope=0.2):
    return jnp.where(x >= 0, x, x * negative_slope) * _SQRT2


if __name__ == "__main__":
    key = jax.random.PRNGKey(0)

    # Primary case: NCHW activation shape, size divisible by 128 -> no-pad path.
    x = jax.random.normal(key, (2, 4, 16, 16), dtype=jnp.float32)
    out = jax.block_until_ready(scaled_leaky_relu(x, negative_slope=0.2))
    assert out.shape == x.shape and out.dtype == x.dtype
    assert jnp.allclose(out, _reference(x, 0.2), atol=1e-6, rtol=1e-6)

    # Multi-step grid with a partial (masked) last block: force small blocks.
    x2 = jax.random.normal(jax.random.PRNGKey(1), (2, 3, 40, 64),
                           dtype=jnp.float32)   # 15360 elems -> rows=15, lane=1024
    out2 = jax.block_until_ready(
        scaled_leaky_relu(x2, negative_slope=0.2, block_bytes=16 << 10))
    assert jnp.allclose(out2, _reference(x2, 0.2), atol=1e-6, rtol=1e-6)

    # Odd element count (not a multiple of 128): tiny-pad fallback path.
    x3 = jax.random.normal(jax.random.PRNGKey(2), (2, 3, 7, 5),
                           dtype=jnp.float32)
    out3 = jax.block_until_ready(scaled_leaky_relu(x3, negative_slope=0.2))
    assert jnp.allclose(out3, _reference(x3, 0.2), atol=1e-6, rtol=1e-6)

    print("KERNEL_OK")
</pallas_src>

<mosaic_0001>
module attributes {stable_mosaic.version = 11 : i64} {
  func.func @_scaled_leaky_relu_kernel(%arg0: i32, %arg1: memref<2x1024xf32, #tpu.memory_space<vmem>>, %arg2: memref<2x1024xf32, #tpu.memory_space<vmem>>) attributes {dimension_semantics = [#tpu.dimension_semantics<parallel>], iteration_bounds = array<i64: 1>, scalar_prefetch = 0 : i64, scratch_operands = 0 : i64, tpu.core_type = #tpu.core_type<tc>, window_params = [{transform_indices = @transform_0, window_bounds = array<i64: 2, 1024>}, {transform_indices = @transform_1, window_bounds = array<i64: 2, 1024>}]} {
    %c0 = arith.constant 0 : index
    %c0_0 = arith.constant 0 : index
    %0 = vector.load %arg1[%c0, %c0_0] : memref<2x1024xf32, #tpu.memory_space<vmem>>, vector<2x1024xf32>
    %cst = arith.constant 0.000000e+00 : f32
    %1 = vector.broadcast %cst : f32 to vector<2x1024xf32>
    %2 = arith.cmpf oge, %0, %1 : vector<2x1024xf32>
    %cst_1 = arith.constant 1.41421354 : f32
    %cst_2 = arith.constant 0.282842726 : f32
    %3 = vector.broadcast %cst_1 : f32 to vector<2x1024xf32>
    %4 = vector.broadcast %cst_2 : f32 to vector<2x1024xf32>
    %5 = arith.select %2, %3, %4 : vector<2x1024xi1>, vector<2x1024xf32>
    %6 = arith.mulf %0, %5 : vector<2x1024xf32>
    %c0_3 = arith.constant 0 : index
    %c0_4 = arith.constant 0 : index
    %7 = vector.load %arg2[%c0_3, %c0_4] : memref<2x1024xf32, #tpu.memory_space<vmem>>, vector<2x1024xf32>
    tpu.vector_store %arg2[%c0_3, %c0_4], %6 {strides = array<i32>} : memref<2x1024xf32, #tpu.memory_space<vmem>>, vector<2x1024xf32>,
    return
  }
  func.func @transform_0(%arg0: i32) -> (i32, i32) {
    %c0_i32 = arith.constant 0 : i32
    %c0_i32_0 = arith.constant 0 : i32
    return %arg0, %c0_i32 : i32, i32
  }
  func.func @transform_1(%arg0: i32) -> (i32, i32) {
    %c0_i32 = arith.constant 0 : i32
    %c0_i32_0 = arith.constant 0 : i32
    return %arg0, %c0_i32 : i32, i32
  }
}

</mosaic_0001>

<bundles_post_ra>
// kernel: tpu_custom_call.1
= control target key start
LH: loop header
LB: loop body
LE: loop exit
PB: predicated region body
PF: predicated region fallthrough
CT: control target
= control target key end

     0   :  { %6 = vsyncpa [#allocation3], 0  ;;  %s124_s0 = inlined_call_operand.hbm [shape: f32[2,1024], index: 0, kind: input, shape index: {}]   ;;  %s125_s1 = inlined_call_operand.hbm [shape: f32[2,1024], index: 1, kind: output, shape index: {}]  }
   0x1   :  { %7 = vsyncpa [#allocation4], 0  ;;  %s13_s8 = sshll.u32 %s124_s0, 4  ;;  %s105_s9 = smov [#allocation2]   ;;  %s14_s8 = int_to_ptr.hbm [resolvable:$true] %s13_s8 }
   0x2   :  { %s15_s10 = sshll.u32 %s105_s9, 4  ;;  %s16_s10 = int_to_ptr.vmem [resolvable:$true] %s15_s10 }
   0x3   :  { %18 = dma.hbm_to_vmem [thread:$0]  %s14_s8, 256, %s16_s10, [#allocation3]  }
   0x4   :  { %101 = dma.done.wait [#allocation3], 256  }
   0x5   :  { %102 = vsyncadd [#allocation3], 4294967040  ;;  %v23_v0 = vld [vmem:[#allocation2] sm:$0xff]  ;;  %v24_v1 = vld [vmem:[#allocation2 + $0x8] sm:$0xff]  ;;  %s106_s11 = smov [#allocation5]   ;;  %s40_s15 = sshll.u32 %s125_s1, 4  ;;  %s41_s15 = int_to_ptr.hbm [resolvable:$true] %s40_s15 }
   0x6   :  { %vm25_vm0 = vcmp.ge.f32.partialorder %v23_v0, 0.0  ;;  %vm26_vm1 = vcmp.ge.f32.partialorder %v24_v1, 0.0  ;;  %s38_s12 = sshll.u32 %s106_s11, 4  ;;  %v107_v2 = vmov 0.28284273   ;;  %s39_s12 = int_to_ptr.vmem [resolvable:$true] %s38_s12 }
   0x7   :  { %v27_v3 = vsel %vm25_vm0, 1.4142135, %v107_v2  ;;  %v28_v4 = vsel %vm26_vm1, 1.4142135, %v107_v2 }
   0x8   :  { %v29_v5 = vmul.f32 %v27_v3, %v23_v0  ;;  %v30_v6 = vmul.f32 %v28_v4, %v24_v1 }
   0xa   :  { %31 = vst [vmem:[#allocation5] sm:$0xff] %v29_v5 }
   0xb   :  { %32 = vst [vmem:[#allocation5 + $0x8] sm:$0xff] %v30_v6 }
   0xc   :  { %43 = dma.vmem_to_hbm [thread:$0]  %s39_s12, 256, %s41_s15, [#allocation4]  }
   0xd   :  { %103 = dma.done.wait [#allocation4], 256  }
   0xe   :  { %104 = vsyncadd [#allocation4], 4294967040 }
   0xf   :  { %48 = vsyncpa [#allocation3], 1 }
  0x10   :  { %49 = vsyncpa [#allocation4], 1 }

</bundles_post_ra>
